<compile_context>
chip_gen: v6e
topology: v6e:2x2x1
jax: 0.10.0
libtpu: 0.0.40
codegen_flags: <defaults>
</compile_context>

<pallas_src>
import functools

import jax
import jax.numpy as jnp
from jax.experimental import pallas as pl
from jax.experimental.pallas import tpu as pltpu


_NUM_ITERS = 6  # z_a evaluations in the lambda_t fixed point (reference uses eps=1e-3 while-loop)


def _ipow(base, k):
    """base ** k for a static int k >= 1 via binary exponentiation (VPU multiplies only)."""
    result = None
    cur = base
    while k:
        if k & 1:
            result = cur if result is None else result * cur
        k >>= 1
        if k:
            cur = cur * cur
    return result


def _static_pow(x, p, *, approx_recip=False):
    """x ** p for strictly-positive x and a static Python exponent p.

    Integer |p| <= 8  -> reciprocal (exact, or approx EUP vrcp if requested) + multiply chain.
    Fractional p      -> exp(p * log(x)) (2 EUP ops), avoiding a powf lowering dependency.
    """
    p = float(p)
    pi = int(round(p))
    if abs(p - pi) < 1e-9:
        if pi == 0:
            return jnp.ones_like(x)
        if abs(pi) <= 8:
            if pi > 0:
                return _ipow(x, pi)
            base = pl.reciprocal(x, approx=True) if approx_recip else 1.0 / x
            return _ipow(base, -pi)
    return jnp.exp(p * jnp.log(x))


def _shared_neg_int_powers(x, ks):
    """{k: x**-k for k in ks} for positive x and static positive ints, sharing one exact
    reciprocal and a single multiply chain (probabilities = u^-5 and u^-4 reuse it)."""
    r = 1.0 / x
    powers = {1: r}
    cur = r
    for k in range(2, max(ks) + 1):
        cur = cur * r
        powers[k] = cur
    return {k: powers[k] for k in ks}


def _bi_tempered_core(x, tgt, *, t1, t2, label_smoothing, axis, num_iters, approx_recip):
    """Per-example bi-tempered loss summed over the class axis (keepdims=True).

    Shared by the Pallas kernel (class axis = 0, sublanes) and the pure-JAX reference
    (class axis = -1) so both compute identical math.
    """
    num_classes = x.shape[axis]

    # Label smoothing (forward() of the reference module).
    if label_smoothing > 0.0:
        scale = 1.0 - num_classes / (num_classes - 1.0) * label_smoothing
        off = label_smoothing / (num_classes - 1.0)
        tgt = tgt * scale + off

    one_minus_t1 = 1.0 - t1
    one_minus_t2 = 1.0 - t2
    inv_1mt2 = 1.0 / one_minus_t2                      # -5 for t2 = 1.2

    # ---- lambda_t(a), t2 > 1 branch ------------------------------------------------------
    # TODO(synk): the reference's data-dependent while-loop (eps=1e-3) is replaced by a
    # fixed-point iteration with a static trip count; only the t2 > 1 branch is implemented.
    mu = jnp.max(x, axis=axis, keepdims=True)
    norm_a0 = x - mu                                    # <= 0 everywhere (incl. garbage cols)
    w0 = one_minus_t2 * norm_a0                         # >= 0; hoisted out of the loop
    # For t2 > 1: (1-t2)*norm_a + 1 = s*w0 + 1 >= 1, so the reference's relu() is a no-op and
    # is omitted here.  Do NOT reuse this loop body for a future t2 < 1 branch.
    u = w0 + 1.0
    z_a = None
    for it in range(num_iters):
        last = it == num_iters - 1
        # exp_t(norm_a, t2) = u ** (1/(1-t2)).  Approximate EUP reciprocal is used for the
        # inner iterations (the fixed point self-corrects); the last z_a feeds the final
        # normaliser so it stays exact.
        e = _static_pow(u, inv_1mt2, approx_recip=(approx_recip and not last))
        z_a = jnp.sum(e, axis=axis, keepdims=True)
        if not last:
            u = _static_pow(z_a, one_minus_t2) * w0 + 1.0
    # lambda = -log_t(1/z_a, t2) + mu = (1 - z_a**(t2-1)) / (1-t2) + mu
    lam = (1.0 - _static_pow(z_a, t2 - 1.0)) / one_minus_t2 + mu

    # ---- probabilities and the tempered loss ---------------------------------------------
    u_f = jnp.maximum(one_minus_t2 * (x - lam) + 1.0, 0.0)   # keep relu for the final exp_t
    p_exp = inv_1mt2                                    # probabilities         = u_f ** p_exp
    pp_exp = one_minus_t1 * inv_1mt2                    # probabilities**(1-t1) = u_f ** pp_exp
    p_i, pp_i = int(round(p_exp)), int(round(pp_exp))
    if (abs(p_exp - p_i) < 1e-9 and abs(pp_exp - pp_i) < 1e-9
            and -8 <= p_i < 0 and -8 <= pp_i < 0):
        # Default t1=0.2, t2=1.2: probabilities = u^-5 and prob**(1-t1) = u^-4 share one chain.
        powers = _shared_neg_int_powers(u_f, (-p_i, -pp_i))
        probabilities = powers[-p_i]
        prob_p = powers[-pp_i]
    else:
        probabilities = _static_pow(u_f, p_exp)
        prob_p = _static_pow(probabilities, one_minus_t1)

    # Share the (1 - t1) power of each operand:
    #   log_t(v, t1) = (v**(1-t1) - 1) / (1-t1)   and   v**(2-t1) = v * v**(1-t1)
    tgt_p = _static_pow(tgt + 1e-8, one_minus_t1)       # eps matches the reference's log_t arg
    log_t_tgt = (tgt_p - 1.0) / one_minus_t1
    log_t_prob = (prob_p - 1.0) / one_minus_t1
    loss1 = tgt * (log_t_tgt - log_t_prob)
    loss2 = (tgt * tgt_p - probabilities * prob_p) / (2.0 - t1)
    return jnp.sum(loss1 - loss2, axis=axis, keepdims=True)


def _bi_tempered_kernel(n_ref, x_ref, tgt_ref, out_ref, *, t1, t2, label_smoothing,
                        num_iters, approx_recip):
    """One (C, TILE_N) tile per grid step -> one independent (8, 128) partial-sum block."""
    i = pl.program_id(0)
    tile_n = x_ref.shape[1]

    # Upcast in-kernel so bf16 callers DMA half the HBM bytes; all math runs in f32.
    x = x_ref[...].astype(jnp.float32)
    tgt = tgt_ref[...].astype(jnp.float32)

    per_ex = _bi_tempered_core(x, tgt, t1=t1, t2=t2, label_smoothing=label_smoothing,
                               axis=0, num_iters=num_iters,
                               approx_recip=approx_recip)           # (1, TILE_N)

    # Mask batch-padding columns (unspecified edge-block data): global column >= n_valid.
    n_valid = n_ref[0]
    col = jax.lax.broadcasted_iota(jnp.int32, per_ex.shape, 1) + i * tile_n
    per_ex = jnp.where(col < n_valid, per_ex, 0.0)

    # Independent per-tile partial sum -> the grid axis can be "parallel" (both v7x TCs busy).
    partial = jnp.sum(per_ex)
    r = jax.lax.broadcasted_iota(jnp.int32, out_ref.shape, 0)
    c = jax.lax.broadcasted_iota(jnp.int32, out_ref.shape, 1)
    out_ref[...] = jnp.where((r == 0) & (c == 0), partial, 0.0)


def _pick_tile_n(n, c):
    """Largest lane tile keeping ~16 live (c, tile_n) f32 buffers (pipeline double-buffers plus
    unrolled-loop temporaries) under ~24 MiB — comfortable on v7x's 64 MiB physical VMEM and
    far inside v5e/v6e's 128 MiB — capped at 32768 lanes and at the padded batch size."""
    budget_bytes = 24 * 1024 * 1024
    per_lane_bytes = 16 * c * 4
    t = budget_bytes // per_lane_bytes
    t = max(128, min(32768, (t // 128) * 128))
    return int(min(t, ((n + 127) // 128) * 128))


def bi_tempered_logistic_loss(inputs, targets, *, t1=0.2, t2=1.2, label_smoothing=0.05,
                              tile_n=None, num_iters=_NUM_ITERS, approx_recip=True):
    """inputs: (N, C) logits, targets: (N, C) one-hot/prob targets -> scalar loss (f32)."""
    # TODO(synk): only the t2 > 1 fixed-point branch of lambda_t_a is implemented (module
    # default t2=1.2); the t2 < 1 binary-search and t == 1 branches are not.
    assert t2 > 1.0, "only the t2 > 1 branch of lambda_t_a is implemented"
    n, c = inputs.shape
    assert targets.shape == (n, c)

    if tile_n is None:
        tile_n = _pick_tile_n(n, c)
    assert tile_n % 128 == 0
    num_tiles = (n + tile_n - 1) // tile_n

    # Lane-dense layout: batch on the 128-wide lane axis, classes on sublanes.  No jnp.pad —
    # Pallas edge-block handling plus the in-kernel mask covers the ragged last tile — and the
    # staging transpose keeps the caller's dtype.
    # TODO(synk): callers that can emit (C, N) activations directly avoid this transpose entirely.
    x_t = inputs.T
    y_t = targets.T
    n_arr = jnp.array([n], dtype=jnp.int32)   # scalar-prefetched (SMEM); not baked into the body

    kernel = functools.partial(
        _bi_tempered_kernel, t1=float(t1), t2=float(t2),
        label_smoothing=float(label_smoothing), num_iters=num_iters,
        approx_recip=approx_recip)

    out = pl.pallas_call(
        kernel,
        out_shape=jax.ShapeDtypeStruct((8, num_tiles * 128), jnp.float32),
        grid_spec=pltpu.PrefetchScalarGridSpec(
            num_scalar_prefetch=1,
            grid=(num_tiles,),
            in_specs=[
                pl.BlockSpec((c, tile_n), lambda i, n_ref: (0, i)),
                pl.BlockSpec((c, tile_n), lambda i, n_ref: (0, i)),
            ],
            out_specs=pl.BlockSpec((8, 128), lambda i, n_ref: (0, i)),
        ),
        compiler_params=pltpu.CompilerParams(
            dimension_semantics=("parallel",),      # independent tiles -> shards across v7x cores
            vmem_limit_bytes=48 * 1024 * 1024,      # > 32 MiB scoped default, < v7x 64 MiB physical
        ),
    )(n_arr, x_t, y_t)
    return jnp.sum(out) / n


def _reference(inputs, targets, *, t1=0.2, t2=1.2, label_smoothing=0.05, num_iters=_NUM_ITERS):
    """Pure-JAX reference mirroring the PyTorch module (class axis last, exact math)."""
    per_ex = _bi_tempered_core(
        inputs.astype(jnp.float32), targets.astype(jnp.float32),
        t1=float(t1), t2=float(t2), label_smoothing=float(label_smoothing),
        axis=-1, num_iters=num_iters, approx_recip=False)
    return jnp.mean(per_ex)


if __name__ == "__main__":
    key = jax.random.PRNGKey(0)
    k1, k2 = jax.random.split(key)
    N, C = 200, 5  # small batch, 5 classes (cassava)
    logits = jax.random.normal(k1, (N, C), dtype=jnp.float32) * 2.0
    labels = jax.random.randint(k2, (N,), 0, C)
    targets = jax.nn.one_hot(labels, C, dtype=jnp.float32)

    ref = _reference(logits, targets)

    # Default path (single auto-sized tile) and a forced-small-tile path that exercises the
    # multi-tile "parallel" grid, per-tile partial outputs and ragged-edge masking.
    loss_big = jax.block_until_ready(bi_tempered_logistic_loss(logits, targets))
    loss_small = jax.block_until_ready(bi_tempered_logistic_loss(logits, targets, tile_n=128))

    # 1e-3 tolerance: the approximate EUP reciprocal in the early fixed-point iterations perturbs
    # lambda at the ~1e-4 level (the last iteration's z_a and the final probabilities are exact).
    assert jnp.allclose(loss_big, ref, atol=1e-3, rtol=1e-3), (loss_big, ref)
    assert jnp.allclose(loss_small, ref, atol=1e-3, rtol=1e-3), (loss_small, ref)
    print("KERNEL_OK")
</pallas_src>

<mosaic_0001>
module attributes {stable_mosaic.version = 11 : i64} {
  func.func @_bi_tempered_kernel(%arg0: i32, %arg1: memref<1xi32, #tpu.memory_space<smem>>, %arg2: memref<5x256xf32, #tpu.memory_space<vmem>>, %arg3: memref<5x256xf32, #tpu.memory_space<vmem>>, %arg4: memref<8x128xf32, #tpu.memory_space<vmem>>) attributes {dimension_semantics = [#tpu.dimension_semantics<parallel>], iteration_bounds = array<i64: 1>, scalar_prefetch = 1 : i64, scratch_operands = 0 : i64, tpu.core_type = #tpu.core_type<tc>, window_params = [{transform_indices = @transform_0, window_bounds = array<i64: 5, 256>}, {transform_indices = @transform_1, window_bounds = array<i64: 5, 256>}, {transform_indices = @transform_2, window_bounds = array<i64: 8, 128>}]} {
    %c0 = arith.constant 0 : index
    %c0_0 = arith.constant 0 : index
    %0 = vector.load %arg2[%c0, %c0_0] : memref<5x256xf32, #tpu.memory_space<vmem>>, vector<5x256xf32>
    %c0_1 = arith.constant 0 : index
    %c0_2 = arith.constant 0 : index
    %1 = vector.load %arg3[%c0_1, %c0_2] : memref<5x256xf32, #tpu.memory_space<vmem>>, vector<5x256xf32>
    %cst = arith.constant 9.375000e-01 : f32
    %2 = vector.broadcast %cst : f32 to vector<5x256xf32>
    %3 = arith.mulf %1, %2 : vector<5x256xf32>
    %cst_3 = arith.constant 1.250000e-02 : f32
    %4 = vector.broadcast %cst_3 : f32 to vector<5x256xf32>
    %5 = arith.addf %3, %4 : vector<5x256xf32>
    %cst_4 = arith.constant dense<0xFF800000> : vector<256xf32>
    %6 = vector.multi_reduction <maximumf>, %0, %cst_4 [0] : vector<5x256xf32> to vector<256xf32>
    %7 = vector.shape_cast %6 : vector<256xf32> to vector<1x256xf32>
    %8 = vector.broadcast %7 : vector<1x256xf32> to vector<5x256xf32>
    %9 = arith.subf %0, %8 : vector<5x256xf32>
    %cst_5 = arith.constant -2.000000e-01 : f32
    %10 = vector.broadcast %cst_5 : f32 to vector<5x256xf32>
    %11 = arith.mulf %10, %9 : vector<5x256xf32>
    %cst_6 = arith.constant 1.000000e+00 : f32
    %12 = vector.broadcast %cst_6 : f32 to vector<5x256xf32>
    %13 = arith.addf %11, %12 : vector<5x256xf32>
    %14 = tpu.reciprocal %13 {approx = true} : vector<5x256xf32> -> vector<5x256xf32>
    %15 = arith.mulf %14, %14 : vector<5x256xf32>
    %16 = arith.mulf %15, %15 : vector<5x256xf32>
    %17 = arith.mulf %14, %16 : vector<5x256xf32>
    %cst_7 = arith.constant dense<0.000000e+00> : vector<256xf32>
    %18 = vector.multi_reduction <add>, %17, %cst_7 [0] : vector<5x256xf32> to vector<256xf32>
    %19 = vector.shape_cast %18 : vector<256xf32> to vector<1x256xf32>
    %20 = math.log %19 : vector<1x256xf32>
    %cst_8 = arith.constant -2.000000e-01 : f32
    %21 = vector.broadcast %cst_8 : f32 to vector<1x256xf32>
    %22 = arith.mulf %21, %20 : vector<1x256xf32>
    %23 = math.exp %22 : vector<1x256xf32>
    %24 = vector.broadcast %23 : vector<1x256xf32> to vector<5x256xf32>
    %25 = arith.mulf %24, %11 : vector<5x256xf32>
    %cst_9 = arith.constant 1.000000e+00 : f32
    %26 = vector.broadcast %cst_9 : f32 to vector<5x256xf32>
    %27 = arith.addf %25, %26 : vector<5x256xf32>
    %28 = tpu.reciprocal %27 {approx = true} : vector<5x256xf32> -> vector<5x256xf32>
    %29 = arith.mulf %28, %28 : vector<5x256xf32>
    %30 = arith.mulf %29, %29 : vector<5x256xf32>
    %31 = arith.mulf %28, %30 : vector<5x256xf32>
    %cst_10 = arith.constant dense<0.000000e+00> : vector<256xf32>
    %32 = vector.multi_reduction <add>, %31, %cst_10 [0] : vector<5x256xf32> to vector<256xf32>
    %33 = vector.shape_cast %32 : vector<256xf32> to vector<1x256xf32>
    %34 = math.log %33 : vector<1x256xf32>
    %cst_11 = arith.constant -2.000000e-01 : f32
    %35 = vector.broadcast %cst_11 : f32 to vector<1x256xf32>
    %36 = arith.mulf %35, %34 : vector<1x256xf32>
    %37 = math.exp %36 : vector<1x256xf32>
    %38 = vector.broadcast %37 : vector<1x256xf32> to vector<5x256xf32>
    %39 = arith.mulf %38, %11 : vector<5x256xf32>
    %cst_12 = arith.constant 1.000000e+00 : f32
    %40 = vector.broadcast %cst_12 : f32 to vector<5x256xf32>
    %41 = arith.addf %39, %40 : vector<5x256xf32>
    %42 = tpu.reciprocal %41 {approx = true} : vector<5x256xf32> -> vector<5x256xf32>
    %43 = arith.mulf %42, %42 : vector<5x256xf32>
    %44 = arith.mulf %43, %43 : vector<5x256xf32>
    %45 = arith.mulf %42, %44 : vector<5x256xf32>
    %cst_13 = arith.constant dense<0.000000e+00> : vector<256xf32>
    %46 = vector.multi_reduction <add>, %45, %cst_13 [0] : vector<5x256xf32> to vector<256xf32>
    %47 = vector.shape_cast %46 : vector<256xf32> to vector<1x256xf32>
    %48 = math.log %47 : vector<1x256xf32>
    %cst_14 = arith.constant -2.000000e-01 : f32
    %49 = vector.broadcast %cst_14 : f32 to vector<1x256xf32>
    %50 = arith.mulf %49, %48 : vector<1x256xf32>
    %51 = math.exp %50 : vector<1x256xf32>
    %52 = vector.broadcast %51 : vector<1x256xf32> to vector<5x256xf32>
    %53 = arith.mulf %52, %11 : vector<5x256xf32>
    %cst_15 = arith.constant 1.000000e+00 : f32
    %54 = vector.broadcast %cst_15 : f32 to vector<5x256xf32>
    %55 = arith.addf %53, %54 : vector<5x256xf32>
    %56 = tpu.reciprocal %55 {approx = true} : vector<5x256xf32> -> vector<5x256xf32>
    %57 = arith.mulf %56, %56 : vector<5x256xf32>
    %58 = arith.mulf %57, %57 : vector<5x256xf32>
    %59 = arith.mulf %56, %58 : vector<5x256xf32>
    %cst_16 = arith.constant dense<0.000000e+00> : vector<256xf32>
    %60 = vector.multi_reduction <add>, %59, %cst_16 [0] : vector<5x256xf32> to vector<256xf32>
    %61 = vector.shape_cast %60 : vector<256xf32> to vector<1x256xf32>
    %62 = math.log %61 : vector<1x256xf32>
    %cst_17 = arith.constant -2.000000e-01 : f32
    %63 = vector.broadcast %cst_17 : f32 to vector<1x256xf32>
    %64 = arith.mulf %63, %62 : vector<1x256xf32>
    %65 = math.exp %64 : vector<1x256xf32>
    %66 = vector.broadcast %65 : vector<1x256xf32> to vector<5x256xf32>
    %67 = arith.mulf %66, %11 : vector<5x256xf32>
    %cst_18 = arith.constant 1.000000e+00 : f32
    %68 = vector.broadcast %cst_18 : f32 to vector<5x256xf32>
    %69 = arith.addf %67, %68 : vector<5x256xf32>
    %70 = tpu.reciprocal %69 {approx = true} : vector<5x256xf32> -> vector<5x256xf32>
    %71 = arith.mulf %70, %70 : vector<5x256xf32>
    %72 = arith.mulf %71, %71 : vector<5x256xf32>
    %73 = arith.mulf %70, %72 : vector<5x256xf32>
    %cst_19 = arith.constant dense<0.000000e+00> : vector<256xf32>
    %74 = vector.multi_reduction <add>, %73, %cst_19 [0] : vector<5x256xf32> to vector<256xf32>
    %75 = vector.shape_cast %74 : vector<256xf32> to vector<1x256xf32>
    %76 = math.log %75 : vector<1x256xf32>
    %cst_20 = arith.constant -2.000000e-01 : f32
    %77 = vector.broadcast %cst_20 : f32 to vector<1x256xf32>
    %78 = arith.mulf %77, %76 : vector<1x256xf32>
    %79 = math.exp %78 : vector<1x256xf32>
    %80 = vector.broadcast %79 : vector<1x256xf32> to vector<5x256xf32>
    %81 = arith.mulf %80, %11 : vector<5x256xf32>
    %cst_21 = arith.constant 1.000000e+00 : f32
    %82 = vector.broadcast %cst_21 : f32 to vector<5x256xf32>
    %83 = arith.addf %81, %82 : vector<5x256xf32>
    %cst_22 = arith.constant 1.000000e+00 : f32
    %84 = vector.broadcast %cst_22 : f32 to vector<5x256xf32>
    %85 = arith.divf %84, %83 : vector<5x256xf32>
    %86 = arith.mulf %85, %85 : vector<5x256xf32>
    %87 = arith.mulf %86, %86 : vector<5x256xf32>
    %88 = arith.mulf %85, %87 : vector<5x256xf32>
    %cst_23 = arith.constant dense<0.000000e+00> : vector<256xf32>
    %89 = vector.multi_reduction <add>, %88, %cst_23 [0] : vector<5x256xf32> to vector<256xf32>
    %90 = vector.shape_cast %89 : vector<256xf32> to vector<1x256xf32>
    %91 = math.log %90 : vector<1x256xf32>
    %cst_24 = arith.constant 2.000000e-01 : f32
    %92 = vector.broadcast %cst_24 : f32 to vector<1x256xf32>
    %93 = arith.mulf %92, %91 : vector<1x256xf32>
    %94 = math.exp %93 : vector<1x256xf32>
    %cst_25 = arith.constant 1.000000e+00 : f32
    %95 = vector.broadcast %cst_25 : f32 to vector<1x256xf32>
    %96 = arith.subf %95, %94 : vector<1x256xf32>
    %cst_26 = arith.constant -2.000000e-01 : f32
    %97 = vector.broadcast %cst_26 : f32 to vector<1x256xf32>
    %98 = arith.divf %96, %97 : vector<1x256xf32>
    %99 = arith.addf %98, %7 : vector<1x256xf32>
    %100 = vector.broadcast %99 : vector<1x256xf32> to vector<5x256xf32>
    %101 = arith.subf %0, %100 : vector<5x256xf32>
    %cst_27 = arith.constant -2.000000e-01 : f32
    %102 = vector.broadcast %cst_27 : f32 to vector<5x256xf32>
    %103 = arith.mulf %102, %101 : vector<5x256xf32>
    %cst_28 = arith.constant 1.000000e+00 : f32
    %104 = vector.broadcast %cst_28 : f32 to vector<5x256xf32>
    %105 = arith.addf %103, %104 : vector<5x256xf32>
    %cst_29 = arith.constant 0.000000e+00 : f32
    %106 = vector.broadcast %cst_29 : f32 to vector<5x256xf32>
    %107 = arith.maximumf %105, %106 : vector<5x256xf32>
    %cst_30 = arith.constant 1.000000e+00 : f32
    %108 = vector.broadcast %cst_30 : f32 to vector<5x256xf32>
    %109 = arith.divf %108, %107 : vector<5x256xf32>
    %110 = arith.mulf %109, %109 : vector<5x256xf32>
    %111 = arith.mulf %110, %109 : vector<5x256xf32>
    %112 = arith.mulf %111, %109 : vector<5x256xf32>
    %113 = arith.mulf %112, %109 : vector<5x256xf32>
    %cst_31 = arith.constant 9.99999993E-9 : f32
    %114 = vector.broadcast %cst_31 : f32 to vector<5x256xf32>
    %115 = arith.addf %5, %114 : vector<5x256xf32>
    %116 = math.log %115 : vector<5x256xf32>
    %cst_32 = arith.constant 8.000000e-01 : f32
    %117 = vector.broadcast %cst_32 : f32 to vector<5x256xf32>
    %118 = arith.mulf %117, %116 : vector<5x256xf32>
    %119 = math.exp %118 : vector<5x256xf32>
    %cst_33 = arith.constant 1.000000e+00 : f32
    %120 = vector.broadcast %cst_33 : f32 to vector<5x256xf32>
    %121 = arith.subf %119, %120 : vector<5x256xf32>
    %cst_34 = arith.constant 8.000000e-01 : f32
    %122 = vector.broadcast %cst_34 : f32 to vector<5x256xf32>
    %123 = arith.divf %121, %122 : vector<5x256xf32>
    %cst_35 = arith.constant 1.000000e+00 : f32
    %124 = vector.broadcast %cst_35 : f32 to vector<5x256xf32>
    %125 = arith.subf %112, %124 : vector<5x256xf32>
    %cst_36 = arith.constant 8.000000e-01 : f32
    %126 = vector.broadcast %cst_36 : f32 to vector<5x256xf32>
    %127 = arith.divf %125, %126 : vector<5x256xf32>
    %128 = arith.subf %123, %127 : vector<5x256xf32>
    %129 = arith.mulf %5, %128 : vector<5x256xf32>
    %130 = arith.mulf %5, %119 : vector<5x256xf32>
    %131 = arith.mulf %113, %112 : vector<5x256xf32>
    %132 = arith.subf %130, %131 : vector<5x256xf32>
    %cst_37 = arith.constant 1.800000e+00 : f32
    %133 = vector.broadcast %cst_37 : f32 to vector<5x256xf32>
    %134 = arith.divf %132, %133 : vector<5x256xf32>
    %135 = arith.subf %129, %134 : vector<5x256xf32>
    %cst_38 = arith.constant dense<0.000000e+00> : vector<256xf32>
    %136 = vector.multi_reduction <add>, %135, %cst_38 [0] : vector<5x256xf32> to vector<256xf32>
    %137 = vector.shape_cast %136 : vector<256xf32> to vector<1x256xf32>
    %c0_39 = arith.constant 0 : index
    %138 = memref.load %arg1[%c0_39] : memref<1xi32, #tpu.memory_space<smem>>
    %139 = tpu.iota {dimensions = array<i32: 1>} : vector<1x256xi32>
    %c256_i32 = arith.constant 256 : i32
    %140 = arith.muli %arg0, %c256_i32 : i32
    %141 = vector.broadcast %140 : i32 to vector<1x256xi32>
    %142 = arith.addi %139, %141 : vector<1x256xi32>
    %143 = vector.broadcast %138 : i32 to vector<1x256xi32>
    %144 = arith.cmpi slt, %142, %143 : vector<1x256xi32>
    %cst_40 = arith.constant 0.000000e+00 : f32
    %145 = vector.broadcast %cst_40 : f32 to vector<1x256xf32>
    %146 = arith.select %144, %137, %145 : vector<1x256xi1>, vector<1x256xf32>
    %147 = vector.shape_cast %146 : vector<1x256xf32> to vector<1x1x256xf32>
    %cst_41 = arith.constant dense<0.000000e+00> : vector<1xf32>
    %148 = vector.multi_reduction <add>, %147, %cst_41 [1, 2] : vector<1x1x256xf32> to vector<1xf32>
    %149 = vector.shape_cast %148 : vector<1xf32> to vector<1x1x1xf32>
    %150 = vector.extract %149[0, 0, 0] : f32 from vector<1x1x1xf32>
    %151 = tpu.iota {dimensions = array<i32: 0>} : vector<8x128xi32>
    %152 = tpu.iota {dimensions = array<i32: 1>} : vector<8x128xi32>
    %c0_i32 = arith.constant 0 : i32
    %153 = vector.broadcast %c0_i32 : i32 to vector<8x128xi32>
    %154 = arith.cmpi eq, %151, %153 : vector<8x128xi32>
    %c0_i32_42 = arith.constant 0 : i32
    %155 = vector.broadcast %c0_i32_42 : i32 to vector<8x128xi32>
    %156 = arith.cmpi eq, %152, %155 : vector<8x128xi32>
    %157 = arith.andi %154, %156 : vector<8x128xi1>
    %cst_43 = arith.constant 0.000000e+00 : f32
    %158 = vector.broadcast %150 : f32 to vector<8x128xf32>
    %159 = vector.broadcast %cst_43 : f32 to vector<8x128xf32>
    %160 = arith.select %157, %158, %159 : vector<8x128xi1>, vector<8x128xf32>
    %c0_44 = arith.constant 0 : index
    %c0_45 = arith.constant 0 : index
    %161 = vector.load %arg4[%c0_44, %c0_45] : memref<8x128xf32, #tpu.memory_space<vmem>>, vector<8x128xf32>
    tpu.vector_store %arg4[%c0_44, %c0_45], %160 {strides = array<i32>} : memref<8x128xf32, #tpu.memory_space<vmem>>, vector<8x128xf32>,
    return
  }
  func.func @transform_0(%arg0: i32, %arg1: memref<1xi32, #tpu.memory_space<smem>>) -> (i32, i32) {
    %c0_i32 = arith.constant 0 : i32
    %c0_i32_0 = arith.constant 0 : i32
    return %c0_i32, %arg0 : i32, i32
  }
  func.func @transform_1(%arg0: i32, %arg1: memref<1xi32, #tpu.memory_space<smem>>) -> (i32, i32) {
    %c0_i32 = arith.constant 0 : i32
    %c0_i32_0 = arith.constant 0 : i32
    return %c0_i32, %arg0 : i32, i32
  }
  func.func @transform_2(%arg0: i32, %arg1: memref<1xi32, #tpu.memory_space<smem>>) -> (i32, i32) {
    %c0_i32 = arith.constant 0 : i32
    %c0_i32_0 = arith.constant 0 : i32
    return %c0_i32, %arg0 : i32, i32
  }
}

</mosaic_0001>

<bundles_post_ra>
// kernel: tpu_custom_call.1
= control target key start
LH: loop header
LB: loop body
LE: loop exit
PB: predicated region body
PF: predicated region fallthrough
CT: control target
= control target key end

     0   :  { %9 = vsyncpa [#allocation5], 0  ;;  %s662_s0 = inlined_call_operand.<no memory space> [shape: s32[1], index: 0, kind: input, shape index: {}]   ;;  %s663_s1 = inlined_call_operand.hbm [shape: f32[5,200], index: 1, kind: input, shape index: {}]   ;;  %s664_s2 = inlined_call_operand.hbm [shape: f32[5,200], index: 2, kind: input, shape index: {}]   ;;  %s665_s3 = inlined_call_operand.hbm [shape: f32[8,128], index: 3, kind: output, shape index: {}]  }
   0x1   :  { %10 = vsyncpa [#allocation8], 0 }
   0x2   :  { %11 = vsyncpa [#allocation6], 0  ;;  %s567_s12 = smov [#allocation4]   ;;  %s568_s14 = smov [#allocation7]  }
   0x3   :  { %s18_s13 = sshll.u32 %s567_s12, 4  ;;  %s28_s15 = sshll.u32 %s568_s14, 4  ;;  %s19_s13 = int_to_ptr.vmem [resolvable:$true] %s18_s13  ;;  %s29_s15 = int_to_ptr.vmem [resolvable:$true] %s28_s15 }
   0x4   :  { %s509_s16 = scalar_lea.vmem %s19_s13, 256  ;;  %p514_p1 = scmp.lt.s32.totalorder %s19_s13, %s19_s13 }
   0x5   :  { %p510_p0 = scmp.ne.s32.totalorder %s19_s13, %s509_s16  ;;  %p515_p2 = scmp.lt.s32.totalorder %s509_s16, %s509_s16 }
   0x7   :  { %p516_p3 = por %p515_p2, %p514_p1 }
   0x9   :  { %p517_p4 = pnand %p516_p3, %p510_p0 }
   0xb   :  { %520 = shalt.err (!%p517_p4)
}
   0xc   :  { %21 = dma.hbm_to_vmem [thread:$0]  %s663_s1, 256, %s19_s13, [#allocation5]  }
   0xd   :  { %s529_s19 = scalar_lea.vmem %s29_s15, 256  ;;  %p534_p6 = scmp.lt.s32.totalorder %s29_s15, %s29_s15 }
   0xe   :  { %p530_p5 = scmp.ne.s32.totalorder %s29_s15, %s529_s19  ;;  %p535_p7 = scmp.lt.s32.totalorder %s529_s19, %s529_s19 }
  0x10   :  { %p536_p8 = por %p535_p7, %p534_p6 }
  0x12   :  { %p537_p9 = pnand %p536_p8, %p530_p5 }
  0x14   :  { %540 = shalt.err (!%p537_p9)
}
  0x15   :  { %31 = dma.hbm_to_vmem [thread:$0]  %s664_s2, 256, %s29_s15, [#allocation8]  }
  0x16   :  { %561 = dma.done.wait [#allocation5], 256  }
  0x17   :  { %562 = vsyncadd [#allocation5], 4294967040 }
  0x18   :  { %563 = dma.done.wait [#allocation8], 256  }
  0x19   :  { %564 = vsyncadd [#allocation8], 4294967040  ;;  %vm46_vm0 = vcmask 1044480   ;;  %v596_v0 = vld [vmem:[#allocation4] sm:$0x1f]  ;;  %vm371_vm3 = vcmask 1040384  }
  0x1a   :  { %v598_v1 = vld [vmem:[#allocation4 + $0x8] sm:$0x1f]  ;;  %v47_v2 = vsel %vm46_vm0, %v596_v0, -inf }
  0x1b   :  { %v54_v3 = vsel %vm46_vm0, %v598_v1, -inf  ;;  %v48_v4 = vrot.slane %v47_v2, 4 }
  0x1c   :  { %v55_v5 = vrot.slane %v54_v3, 4 }
  0x1d   :  { %v49_v6 = vmax.f32 %v47_v2, %v48_v4 }
  0x1e   :  { %v56_v7 = vmax.f32 %v54_v3, %v55_v5 }
  0x1f   :  { %v50_v8 = vrot.slane %v49_v6, 2 }
  0x20   :  { %v57_v9 = vrot.slane %v56_v7, 2 }
  0x21   :  { %v51_v10 = vmax.f32 %v49_v6, %v50_v8 }
  0x22   :  { %v58_v11 = vmax.f32 %v56_v7, %v57_v9 }
  0x23   :  { %v52_v12 = vrot.slane %v51_v10, 1 }
  0x24   :  { %v59_v13 = vrot.slane %v58_v11, 1 }
  0x25   :  { %v604_v14 = vmax.f32 %v51_v10, %v52_v12 }
  0x26   :  { %v606_v15 = vmax.f32 %v58_v11, %v59_v13 }
  0x27   :  { %v61_v16 = vsub.f32 %v596_v0, %v604_v14 }
  0x28   :  { %v62_v17 = vsub.f32 %v598_v1, %v606_v15 }
  0x29   :  { %v612_v18 = vmul.f32 -0.2, %v61_v16 }
  0x2a   :  { %v614_v19 = vmul.f32 -0.2, %v62_v17 }
  0x2b   :  { %v65_v20 = vadd.f32 1.0, %v612_v18 }
  0x2c   :  { %v66_v21 = vadd.f32 1.0, %v614_v19 }
  0x2d   :  { %417 = vrcp.f32 %v65_v20 }
  0x2e   :  { %419 = vrcp.f32 %v66_v21 }
  0x3a   :  { %v418_v22 = vpop.eup %417 }
  0x3b   :  { %v420_v23 = vpop.eup %419  ;;  %v69_v24 = vmul.f32 %v418_v22, %v418_v22 }
  0x3c   :  { %v70_v25 = vmul.f32 %v420_v23, %v420_v23 }
  0x3d   :  { %v71_v26 = vmul.f32 %v69_v24, %v69_v24 }
  0x3e   :  { %v72_v27 = vmul.f32 %v70_v25, %v70_v25 }
  0x3f   :  { %v73_v28 = vmul.f32 %v418_v22, %v71_v26 }
  0x40   :  { %v74_v29 = vmul.f32 %v420_v23, %v72_v27 }
  0x41   :  { %v75_v30 = vsel %vm46_vm0, %v73_v28, 0.0 }
  0x42   :  { %v76_v31 = vrot.slane %v75_v30, 4  ;;  %v82_v32 = vsel %vm46_vm0, %v74_v29, 0.0 }
  0x43   :  { %v83_v33 = vrot.slane %v82_v32, 4 }
  0x44   :  { %v77_v34 = vadd.f32 %v76_v31, %v75_v30 }
  0x45   :  { %v84_v35 = vadd.f32 %v83_v33, %v82_v32 }
  0x46   :  { %v78_v36 = vrot.slane %v77_v34, 2 }
  0x47   :  { %v85_v37 = vrot.slane %v84_v35, 2 }
  0x48   :  { %v79_v38 = vadd.f32 %v78_v36, %v77_v34 }
  0x49   :  { %v86_v39 = vadd.f32 %v85_v37, %v84_v35 }
  0x4a   :  { %v80_v40 = vrot.slane %v79_v38, 1 }
  0x4b   :  { %v87_v41 = vrot.slane %v86_v39, 1 }
  0x4c   :  { %v81_v42 = vadd.f32 %v80_v40, %v79_v38 }
  0x4d   :  { %v88_v43 = vadd.f32 %v87_v41, %v86_v39 }
  0x4e   :  { %421 = vlog2.f32 %v81_v42 }
  0x4f   :  { %423 = vlog2.f32 %v88_v43 }
  0x5b   :  { %v422_v44 = vpop.eup %421 }
  0x5c   :  { %v424_v45 = vpop.eup %423  ;;  %v90_v46 = vmul.f32 0.6931472, %v422_v44 }
  0x5d   :  { %v92_v47 = vmul.f32 0.6931472, %v424_v45 }
  0x5e   :  { %v93_v48 = vmul.f32 -0.2, %v90_v46 }
  0x5f   :  { %v94_v49 = vmul.f32 -0.2, %v92_v47 }
  0x60   :  { %v95_v50 = vmul.f32 1.442695, %v93_v48 }
  0x61   :  { %v97_v51 = vmul.f32 1.442695, %v94_v49 }
  0x62   :  { %425 = vpow2.f32 %v95_v50 }
  0x63   :  { %427 = vpow2.f32 %v97_v51 }
  0x6f   :  { %v426_v52 = vpop.eup %425 }
  0x70   :  { %v428_v53 = vpop.eup %427  ;;  %v99_v54 = vmul.f32 %v426_v52, %v612_v18 }
  0x71   :  { %v100_v55 = vmul.f32 %v428_v53, %v614_v19 }
  0x72   :  { %v101_v56 = vadd.f32 1.0, %v99_v54 }
  0x73   :  { %v102_v57 = vadd.f32 1.0, %v100_v55 }
  0x74   :  { %429 = vrcp.f32 %v101_v56 }
  0x75   :  { %431 = vrcp.f32 %v102_v57 }
  0x81   :  { %v430_v58 = vpop.eup %429 }
  0x82   :  { %v432_v59 = vpop.eup %431  ;;  %v105_v60 = vmul.f32 %v430_v58, %v430_v58 }
  0x83   :  { %v106_v61 = vmul.f32 %v432_v59, %v432_v59 }
  0x84   :  { %v107_v62 = vmul.f32 %v105_v60, %v105_v60 }
  0x85   :  { %v108_v63 = vmul.f32 %v106_v61, %v106_v61 }
  0x86   :  { %v109_v2 = vmul.f32 %v430_v58, %v107_v62 }
  0x87   :  { %v110_v3 = vmul.f32 %v432_v59, %v108_v63 }
  0x88   :  { %v111_v4 = vsel %vm46_vm0, %v109_v2, 0.0 }
  0x89   :  { %v112_v5 = vrot.slane %v111_v4, 4  ;;  %v118_v6 = vsel %vm46_vm0, %v110_v3, 0.0 }
  0x8a   :  { %v119_v7 = vrot.slane %v118_v6, 4 }
  0x8b   :  { %v113_v8 = vadd.f32 %v112_v5, %v111_v4 }
  0x8c   :  { %v120_v9 = vadd.f32 %v119_v7, %v118_v6 }
  0x8d   :  { %v114_v10 = vrot.slane %v113_v8, 2 }
  0x8e   :  { %v121_v11 = vrot.slane %v120_v9, 2 }
  0x8f   :  { %v115_v12 = vadd.f32 %v114_v10, %v113_v8 }
  0x90   :  { %v122_v13 = vadd.f32 %v121_v11, %v120_v9 }
  0x91   :  { %v116_v16 = vrot.slane %v115_v12, 1 }
  0x92   :  { %v123_v17 = vrot.slane %v122_v13, 1 }
  0x93   :  { %v117_v20 = vadd.f32 %v116_v16, %v115_v12 }
  0x94   :  { %v124_v21 = vadd.f32 %v123_v17, %v122_v13 }
  0x95   :  { %433 = vlog2.f32 %v117_v20 }
  0x96   :  { %435 = vlog2.f32 %v124_v21 }
  0xa2   :  { %v434_v22 = vpop.eup %433 }
  0xa3   :  { %v436_v23 = vpop.eup %435  ;;  %v126_v24 = vmul.f32 0.6931472, %v434_v22 }
  0xa4   :  { %v128_v25 = vmul.f32 0.6931472, %v436_v23 }
  0xa5   :  { %v129_v26 = vmul.f32 -0.2, %v126_v24 }
  0xa6   :  { %v130_v27 = vmul.f32 -0.2, %v128_v25 }
  0xa7   :  { %v131_v28 = vmul.f32 1.442695, %v129_v26 }
  0xa8   :  { %v133_v29 = vmul.f32 1.442695, %v130_v27 }
  0xa9   :  { %437 = vpow2.f32 %v131_v28 }
  0xaa   :  { %439 = vpow2.f32 %v133_v29 }
  0xb6   :  { %v438_v30 = vpop.eup %437 }
  0xb7   :  { %v440_v31 = vpop.eup %439  ;;  %v135_v32 = vmul.f32 %v438_v30, %v612_v18 }
  0xb8   :  { %v136_v33 = vmul.f32 %v440_v31, %v614_v19 }
  0xb9   :  { %v137_v34 = vadd.f32 1.0, %v135_v32 }
  0xba   :  { %v138_v35 = vadd.f32 1.0, %v136_v33 }
  0xbb   :  { %441 = vrcp.f32 %v137_v34 }
  0xbc   :  { %443 = vrcp.f32 %v138_v35 }
  0xc8   :  { %v442_v36 = vpop.eup %441 }
  0xc9   :  { %v444_v37 = vpop.eup %443  ;;  %v141_v38 = vmul.f32 %v442_v36, %v442_v36 }
  0xca   :  { %v142_v39 = vmul.f32 %v444_v37, %v444_v37 }
  0xcb   :  { %v143_v40 = vmul.f32 %v141_v38, %v141_v38 }
  0xcc   :  { %v144_v41 = vmul.f32 %v142_v39, %v142_v39 }
  0xcd   :  { %v145_v42 = vmul.f32 %v442_v36, %v143_v40 }
  0xce   :  { %v146_v43 = vmul.f32 %v444_v37, %v144_v41 }
  0xcf   :  { %v147_v44 = vsel %vm46_vm0, %v145_v42, 0.0 }
  0xd0   :  { %v148_v45 = vrot.slane %v147_v44, 4  ;;  %v154_v46 = vsel %vm46_vm0, %v146_v43, 0.0 }
  0xd1   :  { %v155_v47 = vrot.slane %v154_v46, 4 }
  0xd2   :  { %v149_v48 = vadd.f32 %v148_v45, %v147_v44 }
  0xd3   :  { %v156_v49 = vadd.f32 %v155_v47, %v154_v46 }
  0xd4   :  { %v150_v50 = vrot.slane %v149_v48, 2 }
  0xd5   :  { %v157_v51 = vrot.slane %v156_v49, 2 }
  0xd6   :  { %v151_v52 = vadd.f32 %v150_v50, %v149_v48 }
  0xd7   :  { %v158_v53 = vadd.f32 %v157_v51, %v156_v49 }
  0xd8   :  { %v152_v54 = vrot.slane %v151_v52, 1 }
  0xd9   :  { %v159_v55 = vrot.slane %v158_v53, 1 }
  0xda   :  { %v153_v56 = vadd.f32 %v152_v54, %v151_v52 }
  0xdb   :  { %v160_v57 = vadd.f32 %v159_v55, %v158_v53 }
  0xdc   :  { %445 = vlog2.f32 %v153_v56 }
  0xdd   :  { %447 = vlog2.f32 %v160_v57 }
  0xe9   :  { %v446_v58 = vpop.eup %445 }
  0xea   :  { %v448_v59 = vpop.eup %447  ;;  %v162_v60 = vmul.f32 0.6931472, %v446_v58 }
  0xeb   :  { %v164_v61 = vmul.f32 0.6931472, %v448_v59 }
  0xec   :  { %v165_v62 = vmul.f32 -0.2, %v162_v60 }
  0xed   :  { %v166_v63 = vmul.f32 -0.2, %v164_v61 }
  0xee   :  { %v167_v2 = vmul.f32 1.442695, %v165_v62 }
  0xef   :  { %v169_v3 = vmul.f32 1.442695, %v166_v63 }
  0xf0   :  { %449 = vpow2.f32 %v167_v2 }
  0xf1   :  { %451 = vpow2.f32 %v169_v3 }
  0xfd   :  { %v450_v4 = vpop.eup %449 }
  0xfe   :  { %v452_v5 = vpop.eup %451  ;;  %v171_v6 = vmul.f32 %v450_v4, %v612_v18 }
  0xff   :  { %v172_v7 = vmul.f32 %v452_v5, %v614_v19 }
 0x100   :  { %v173_v8 = vadd.f32 1.0, %v171_v6 }
 0x101   :  { %v174_v9 = vadd.f32 1.0, %v172_v7 }
 0x102   :  { %453 = vrcp.f32 %v173_v8 }
 0x103   :  { %455 = vrcp.f32 %v174_v9 }
 0x10f   :  { %v454_v10 = vpop.eup %453 }
 0x110   :  { %v456_v11 = vpop.eup %455  ;;  %v177_v12 = vmul.f32 %v454_v10, %v454_v10 }
 0x111   :  { %v178_v13 = vmul.f32 %v456_v11, %v456_v11 }
 0x112   :  { %v179_v16 = vmul.f32 %v177_v12, %v177_v12 }
 0x113   :  { %v180_v17 = vmul.f32 %v178_v13, %v178_v13 }
 0x114   :  { %v181_v20 = vmul.f32 %v454_v10, %v179_v16 }
 0x115   :  { %v182_v21 = vmul.f32 %v456_v11, %v180_v17 }
 0x116   :  { %v183_v22 = vsel %vm46_vm0, %v181_v20, 0.0 }
 0x117   :  { %v184_v23 = vrot.slane %v183_v22, 4  ;;  %v190_v24 = vsel %vm46_vm0, %v182_v21, 0.0 }
 0x118   :  { %v191_v25 = vrot.slane %v190_v24, 4 }
 0x119   :  { %v185_v26 = vadd.f32 %v184_v23, %v183_v22 }
 0x11a   :  { %v192_v27 = vadd.f32 %v191_v25, %v190_v24 }
 0x11b   :  { %v186_v28 = vrot.slane %v185_v26, 2 }
 0x11c   :  { %v193_v29 = vrot.slane %v192_v27, 2 }
 0x11d   :  { %v187_v30 = vadd.f32 %v186_v28, %v185_v26 }
 0x11e   :  { %v194_v31 = vadd.f32 %v193_v29, %v192_v27 }
 0x11f   :  { %v188_v32 = vrot.slane %v187_v30, 1 }
 0x120   :  { %v195_v33 = vrot.slane %v194_v31, 1 }
 0x121   :  { %v189_v34 = vadd.f32 %v188_v32, %v187_v30 }
 0x122   :  { %v196_v35 = vadd.f32 %v195_v33, %v194_v31 }
 0x123   :  { %457 = vlog2.f32 %v189_v34 }
 0x124   :  { %459 = vlog2.f32 %v196_v35 }
 0x130   :  { %v458_v36 = vpop.eup %457 }
 0x131   :  { %v460_v37 = vpop.eup %459  ;;  %v198_v38 = vmul.f32 0.6931472, %v458_v36 }
 0x132   :  { %v200_v39 = vmul.f32 0.6931472, %v460_v37 }
 0x133   :  { %v201_v40 = vmul.f32 -0.2, %v198_v38 }
 0x134   :  { %v202_v41 = vmul.f32 -0.2, %v200_v39 }
 0x135   :  { %v203_v42 = vmul.f32 1.442695, %v201_v40 }
 0x136   :  { %v205_v43 = vmul.f32 1.442695, %v202_v41 }
 0x137   :  { %461 = vpow2.f32 %v203_v42 }
 0x138   :  { %463 = vpow2.f32 %v205_v43 }
 0x144   :  { %v462_v44 = vpop.eup %461 }
 0x145   :  { %v464_v45 = vpop.eup %463  ;;  %v207_v46 = vmul.f32 %v462_v44, %v612_v18 }
 0x146   :  { %v208_v47 = vmul.f32 %v464_v45, %v614_v19 }
 0x147   :  { %v209_v48 = vadd.f32 1.0, %v207_v46 }
 0x148   :  { %v210_v49 = vadd.f32 1.0, %v208_v47 }
 0x149   :  { %465 = vrcp.f32 %v209_v48  ;;  %v40_v48 = vld [vmem:[#allocation7] sm:$0x1f] }
 0x14a   :  { %467 = vrcp.f32 %v210_v49  ;;  %v41_v49 = vld [vmem:[#allocation7 + $0x8] sm:$0x1f] }
 0x156   :  { %v466_v50 = vpop.eup %465 }
 0x157   :  { %v468_v51 = vpop.eup %467  ;;  %v213_v52 = vmul.f32 %v466_v50, %v466_v50 }
 0x158   :  { %v214_v53 = vmul.f32 %v468_v51, %v468_v51 }
 0x159   :  { %v215_v54 = vmul.f32 %v213_v52, %v213_v52 }
 0x15a   :  { %v216_v55 = vmul.f32 %v214_v53, %v214_v53 }
 0x15b   :  { %v217_v56 = vmul.f32 %v466_v50, %v215_v54  ;;  %v42_v50 = vmul.f32 0.9375, %v40_v48 }
 0x15c   :  { %v218_v57 = vmul.f32 %v468_v51, %v216_v55  ;;  %v43_v51 = vmul.f32 0.9375, %v41_v49 }
 0x15d   :  { %v219_v58 = vsel %vm46_vm0, %v217_v56, 0.0  ;;  %v640_v52 = vadd.f32 0.0125, %v42_v50 }
 0x15e   :  { %v220_v59 = vrot.slane %v219_v58, 4  ;;  %v226_v60 = vsel %vm46_vm0, %v218_v57, 0.0  ;;  %v642_v53 = vadd.f32 0.0125, %v43_v51 }
 0x15f   :  { %v227_v61 = vrot.slane %v226_v60, 4  ;;  %v308_v57 = vadd.f32 1e-08, %v640_v52 }
 0x160   :  { %v221_v62 = vadd.f32 %v220_v59, %v219_v58  ;;  %v309_v59 = vadd.f32 1e-08, %v642_v53 }
 0x161   :  { %v228_v63 = vadd.f32 %v227_v61, %v226_v60 }
 0x162   :  { %v222_v2 = vrot.slane %v221_v62, 2 }
 0x163   :  { %v229_v3 = vrot.slane %v228_v63, 2 }
 0x164   :  { %v223_v4 = vadd.f32 %v222_v2, %v221_v62 }
 0x165   :  { %v230_v5 = vadd.f32 %v229_v3, %v228_v63 }
 0x166   :  { %v224_v6 = vrot.slane %v223_v4, 1 }
 0x167   :  { %v231_v7 = vrot.slane %v230_v5, 1 }
 0x168   :  { %v225_v8 = vadd.f32 %v224_v6, %v223_v4 }
 0x169   :  { %v232_v9 = vadd.f32 %v231_v7, %v230_v5 }
 0x16a   :  { %469 = vlog2.f32 %v225_v8 }
 0x16b   :  { %471 = vlog2.f32 %v232_v9 }
 0x177   :  { %v470_v10 = vpop.eup %469 }
 0x178   :  { %v472_v11 = vpop.eup %471  ;;  %v234_v12 = vmul.f32 0.6931472, %v470_v10 }
 0x179   :  { %v236_v13 = vmul.f32 0.6931472, %v472_v11 }
 0x17a   :  { %v237_v16 = vmul.f32 -0.2, %v234_v12 }
 0x17b   :  { %v238_v17 = vmul.f32 -0.2, %v236_v13 }
 0x17c   :  { %v239_v20 = vmul.f32 1.442695, %v237_v16 }
 0x17d   :  { %v241_v21 = vmul.f32 1.442695, %v238_v17 }
 0x17e   :  { %473 = vpow2.f32 %v239_v20 }
 0x17f   :  { %475 = vpow2.f32 %v241_v21 }
 0x18b   :  { %v474_v22 = vpop.eup %473 }
 0x18c   :  { %v476_v23 = vpop.eup %475  ;;  %v243_v24 = vmul.f32 %v474_v22, %v612_v18 }
 0x18d   :  { %v244_v25 = vmul.f32 %v476_v23, %v614_v19 }
 0x18e   :  { %v245_v26 = vadd.f32 1.0, %v243_v24 }
 0x18f   :  { %v246_v27 = vadd.f32 1.0, %v244_v25 }
 0x190   :  { %477 = vrcp.f32 %v245_v26 }
 0x191   :  { %479 = vrcp.f32 %v246_v27 }
 0x19d   :  { %v478_v28 = vpop.eup %477 }
 0x19e   :  { %v480_v29 = vpop.eup %479  ;;  %v251_v30 = vmul.f32 %v478_v28, %v478_v28 }
 0x19f   :  { %v252_v31 = vmul.f32 %v480_v29, %v480_v29 }
 0x1a0   :  { %v253_v32 = vmul.f32 %v251_v30, %v251_v30 }
 0x1a1   :  { %v254_v33 = vmul.f32 %v252_v31, %v252_v31 }
 0x1a2   :  { %v255_v34 = vmul.f32 %v478_v28, %v253_v32 }
 0x1a3   :  { %v256_v35 = vmul.f32 %v480_v29, %v254_v33 }
 0x1a4   :  { %v257_v36 = vsel %vm46_vm0, %v255_v34, 0.0 }
 0x1a5   :  { %v258_v37 = vrot.slane %v257_v36, 4  ;;  %v264_v38 = vsel %vm46_vm0, %v256_v35, 0.0 }
 0x1a6   :  { %v265_v18 = vrot.slane %v264_v38, 4 }
 0x1a7   :  { %v259_v39 = vadd.f32 %v258_v37, %v257_v36 }
 0x1a8   :  { %v266_v19 = vadd.f32 %v265_v18, %v264_v38 }
 0x1a9   :  { %v260_v40 = vrot.slane %v259_v39, 2 }
 0x1aa   :  { %v267_v41 = vrot.slane %v266_v19, 2 }
 0x1ab   :  { %v261_v42 = vadd.f32 %v260_v40, %v259_v39 }
 0x1ac   :  { %v268_v43 = vadd.f32 %v267_v41, %v266_v19 }
 0x1ad   :  { %v262_v44 = vrot.slane %v261_v42, 1 }
 0x1ae   :  { %v269_v45 = vrot.slane %v268_v43, 1 }
 0x1af   :  { %v263_v46 = vadd.f32 %v262_v44, %v261_v42 }
 0x1b0   :  { %v270_v47 = vadd.f32 %v269_v45, %v268_v43 }
 0x1b1   :  { %481 = vlog2.f32 %v263_v46 }
 0x1b2   :  { %483 = vlog2.f32 %v270_v47 }
 0x1b3   :  { %485 = vlog2.f32 %v308_v57 }
 0x1b4   :  { %487 = vlog2.f32 %v309_v59 }
 0x1be   :  { %v482_v54 = vpop.eup %481 }
 0x1bf   :  { %v484_v55 = vpop.eup %483  ;;  %v272_v56 = vmul.f32 0.6931472, %v482_v54 }
 0x1c0   :  { %v274_v58 = vmul.f32 0.6931472, %v484_v55  ;;  %v486_v2 = vpop.eup %485 }
 0x1c1   :  { %v275_v60 = vmul.f32 0.2, %v272_v56  ;;  %v488_v3 = vpop.eup %487  ;;  %v311_v7 = vmul.f32 0.6931472, %v486_v2 }
 0x1c2   :  { %v276_v61 = vmul.f32 0.2, %v274_v58  ;;  %v313_v9 = vmul.f32 0.6931472, %v488_v3 }
 0x1c3   :  { %v277_v62 = vmul.f32 1.442695, %v275_v60  ;;  %v314_v13 = vmul.f32 0.8, %v311_v7  ;;  %v359_v60 = vlaneseq }
 0x1c4   :  { %v279_v63 = vmul.f32 1.442695, %v276_v61  ;;  %v315_v17 = vmul.f32 0.8, %v313_v9 }
 0x1c5   :  { %489 = vpow2.f32 %v277_v62  ;;  %v316_v23 = vmul.f32 1.442695, %v314_v13 }
 0x1c6   :  { %491 = vpow2.f32 %v279_v63  ;;  %v318_v25 = vmul.f32 1.442695, %v315_v17 }
 0x1c7   :  { %493 = vpow2.f32 %v316_v23 }
 0x1c8   :  { %495 = vpow2.f32 %v318_v25 }
 0x1d2   :  { %v490_v4 = vpop.eup %489 }
 0x1d3   :  { %v492_v5 = vpop.eup %491  ;;  %v281_v6 = vsub.f32 1.0, %v490_v4  ;;  %v360_v4 = vand.u32 127, %v359_v60 }
 0x1d4   :  { %v282_v8 = vsub.f32 1.0, %v492_v5 }
 0x1d5   :  { %v284_v10 = vmul.f32 -5.0, %v281_v6  ;;  %vm387_vm5 = vcmp.eq.s32.totalorder %v360_v4, 0 }
 0x1d6   :  { %v285_v11 = vmul.f32 -5.0, %v282_v8 }
 0x1d7   :  { %v286_v12 = vadd.f32 %v284_v10, %v604_v14  ;;  %v494_v14 = vpop.eup %493 }
 0x1d8   :  { %v287_v16 = vadd.f32 %v285_v11, %v606_v15  ;;  %v496_v30 = vpop.eup %495  ;;  %v333_v19 = vmul.f32 %v494_v14, %v640_v52 }
 0x1d9   :  { %v288_v20 = vsub.f32 %v596_v0, %v286_v12  ;;  %v409_v35 = vadd.f32 -1.0, %v496_v30  ;;  %v334_v43 = vmul.f32 %v496_v30, %v642_v53 }
 0x1da   :  { %v289_v21 = vsub.f32 %v598_v1, %v287_v16  ;;  %v408_v1 = vadd.f32 -1.0, %v494_v14  ;;  %v385_v14 = vshrl.u32 %v359_v60, 7 }
 0x1db   :  { %v290_v22 = vmul.f32 -0.2, %v288_v20  ;;  %v324_v41 = vmul.f32 1.25, %v409_v35 }
 0x1dc   :  { %v291_v24 = vmul.f32 -0.2, %v289_v21  ;;  %v323_v18 = vmul.f32 1.25, %v408_v1  ;;  %vm386_vm4 = vcmp.eq.s32.totalorder %v385_v14, 0 }
 0x1dd   :  { %v292_v26 = vadd.f32 1.0, %v290_v22  ;;  %vm388_vm6 = vmand %vm386_vm4, %vm387_vm5 }
 0x1de   :  { %v293_v27 = vadd.f32 1.0, %v291_v24 }
 0x1df   :  { %v294_v28 = vmax.f32 %v292_v26, 0.0 }
 0x1e0   :  { %v295_v29 = vmax.f32 %v293_v27, 0.0 }
 0x1e1   :  { %497 = vrcp.f32 %v294_v28 }
 0x1e2   :  { %499 = vrcp.f32 %v295_v29 }
 0x1ee   :  { %v498_v15 = vpop.eup %497 }
 0x1ef   :  { %v500_v31 = vpop.eup %499  ;;  %v300_v32 = vmul.f32 %v498_v15, %v498_v15 }
 0x1f0   :  { %v301_v0 = vmul.f32 %v500_v31, %v500_v31 }
 0x1f1   :  { %v302_v33 = vmul.f32 %v498_v15, %v300_v32 }
 0x1f2   :  { %v303_v34 = vmul.f32 %v500_v31, %v301_v0 }
 0x1f3   :  { %v304_v36 = vmul.f32 %v498_v15, %v302_v33 }
 0x1f4   :  { %v305_v37 = vmul.f32 %v500_v31, %v303_v34 }
 0x1f5   :  { %v306_v38 = vmul.f32 %v498_v15, %v304_v36  ;;  %v410_v39 = vadd.f32 -1.0, %v304_v36 }
 0x1f6   :  { %v307_v40 = vmul.f32 %v500_v31, %v305_v37  ;;  %v411_v42 = vadd.f32 -1.0, %v305_v37 }
 0x1f7   :  { %v327_v44 = vmul.f32 1.25, %v410_v39  ;;  %v335_v45 = vmul.f32 %v306_v38, %v304_v36 }
 0x1f8   :  { %v328_v46 = vmul.f32 1.25, %v411_v42  ;;  %v336_v47 = vmul.f32 %v307_v40, %v305_v37 }
 0x1f9   :  { %v329_v48 = vsub.f32 %v323_v18, %v327_v44  ;;  %v337_v49 = vsub.f32 %v333_v19, %v335_v45 }
 0x1fa   :  { %v330_v50 = vsub.f32 %v324_v41, %v328_v46  ;;  %v338_v51 = vsub.f32 %v334_v43, %v336_v47 }
 0x1fb   :  { %v331_v54 = vmul.f32 %v329_v48, %v640_v52  ;;  %v340_v55 = vmul.f32 0.5555556, %v337_v49  ;;  %v361_v52 = vadd.s32 128, %v360_v4 }
 0x1fc   :  { %v332_v56 = vmul.f32 %v330_v50, %v642_v53  ;;  %v341_v57 = vmul.f32 0.5555556, %v338_v51  ;;  %v366_v53 = vstv %s662_s0  ;;  %s569_s0 = smov [#allocation9]  }
 0x1fd   :  { %v342_v58 = vsub.f32 %v331_v54, %v340_v55  ;;  %vm367_vm1 = vcmp.lt.s32.totalorder %v360_v4, %v366_v53  ;;  %vm368_vm2 = vcmp.lt.s32.totalorder %v361_v52, %v366_v53  ;;  %s398_s22 = sshll.u32 %s569_s0, 4  ;;  %s399_s22 = int_to_ptr.vmem [resolvable:$true] %s398_s22 }
 0x1fe   :  { %v343_v59 = vsub.f32 %v332_v56, %v341_v57  ;;  %s541_s24 = scalar_lea.vmem %s399_s22, 128  ;;  %p546_p11 = scmp.lt.s32.totalorder %s399_s22, %s399_s22 }
 0x1ff   :  { %v344_v61 = vsel %vm46_vm0, %v342_v58, 0.0  ;;  %p542_p10 = scmp.ne.s32.totalorder %s399_s22, %s541_s24  ;;  %p547_p12 = scmp.lt.s32.totalorder %s541_s24, %s541_s24 }
 0x200   :  { %v345_v62 = vrot.slane %v344_v61, 4  ;;  %v351_v63 = vsel %vm46_vm0, %v343_v59, 0.0 }
 0x201   :  { %v352_v2 = vrot.slane %v351_v63, 4  ;;  %p548_p13 = por %p547_p12, %p546_p11 }
 0x202   :  { %v346_v3 = vadd.f32 %v345_v62, %v344_v61 }
 0x203   :  { %v353_v5 = vadd.f32 %v352_v2, %v351_v63  ;;  %p549_p0 = pnand %p548_p13, %p542_p10 }
 0x204   :  { %v347_v6 = vrot.slane %v346_v3, 2 }
 0x205   :  { %v354_v7 = vrot.slane %v353_v5, 2 }
 0x206   :  { %v348_v8 = vadd.f32 %v347_v6, %v346_v3 }
 0x207   :  { %v355_v9 = vadd.f32 %v354_v7, %v353_v5 }
 0x208   :  { %v349_v10 = vrot.slane %v348_v8, 1 }
 0x209   :  { %v356_v11 = vrot.slane %v355_v9, 1 }
 0x20a   :  { %v350_v12 = vadd.f32 %v349_v10, %v348_v8 }
 0x20b   :  { %v357_v13 = vadd.f32 %v356_v11, %v355_v9 }
 0x20c   :  { %v369_v16 = vsel %vm367_vm1, %v350_v12, 0.0 }
 0x20d   :  { %v370_v17 = vsel %vm368_vm2, %v357_v13, 0.0  ;;  %v372_v20 = vsel %vm371_vm3, %v369_v16, 0.0 }
 0x20e   :  { %v373_v21 = vsel %vm371_vm3, %v370_v17, 0.0 }
 0x20f   :  { %v374_v22 = vadd.f32 %v373_v21, %v372_v20 }
 0x211   :  { %375 = vadd.xlane.f32.xlu0 %v374_v22 }
 0x29a   :  { %v376_v23 = vpop.xlane.xlu0 %375 }
 0x29b   :  { %v377_v24 = vrot.slane %v376_v23, 4 }
 0x29d   :  { %v378_v25 = vadd.f32 %v377_v24, %v376_v23 }
 0x29f   :  { %v379_v26 = vrot.slane %v378_v25, 2 }
 0x2a1   :  { %v380_v27 = vadd.f32 %v379_v26, %v378_v25 }
 0x2a3   :  { %v381_v28 = vrot.slane %v380_v27, 1 }
 0x2a5   :  { %v382_v29 = vadd.f32 %v381_v28, %v380_v27 }
 0x2a7   :  { %412 = vpush %v382_v29 }
 0x2d8   :  { %s413_s23 = spop %412 }
 0x2d9   :  { %v389_v30 = vstv %s413_s23 }
 0x2da   :  { %v390_v15 = vsel %vm388_vm6, %v389_v30, 0.0 }
 0x2db   :  { %391 = vst [vmem:[#allocation9] sm:$0xff] %v390_v15 }
 0x2dc   :  { %552 = shalt.err (!%p549_p0)
}
 0x2dd   :  { %401 = dma.vmem_to_hbm [thread:$0]  %s399_s22, 128, %s665_s3, [#allocation6]  }
 0x2de   :  { %565 = dma.done.wait [#allocation6], 128  }
 0x2df   :  { %566 = vsyncadd [#allocation6], 4294967168 }
 0x2e0   :  { %405 = vsyncpa [#allocation5], 1 }
 0x2e1   :  { %406 = vsyncpa [#allocation8], 1 }
 0x2e2   :  { %407 = vsyncpa [#allocation6], 1 }

</bundles_post_ra>
